<compile_context>
chip_gen: v7x
topology: tpu7x:2x2x1
jax: 0.10.0
libtpu: 0.0.40
codegen_flags: <defaults>
</compile_context>

<pallas_src>
import functools

import jax
import jax.numpy as jnp
import numpy as np
from jax.experimental import pallas as pl
from jax.experimental.pallas import tpu as pltpu


# -----------------------------------------------------------------------------
# Fused BasicBlock kernel (one batch image per grid step)
# -----------------------------------------------------------------------------
def _basic_block_kernel(x_ref, w1_ref, b1_ref, w2_ref, b2_ref, *rest,
                        stride, Ho, Wo, planes, has_conv_sc):
    if has_conv_sc:
        wsc_ref, bsc_ref, out_ref, mid_ref = rest
    else:
        out_ref, mid_ref = rest

    s = stride
    g = 2 // s + 1           # distinct spatial block offsets per axis for a 3x3 tap
    M = Ho * Wo
    K1 = x_ref.shape[-1]     # s*s*Cin (space-to-depth channel layout)

    def x_slab(dy, dx):
        # (Ho, Wo, K1) shifted window of the space-to-depth input, flattened
        # to a 2D MXU operand.  All slices are static and unit-stride.
        return x_ref[dy:dy + Ho, dx:dx + Wo, :].reshape(M, K1)

    # ---- conv1 (3x3, stride s) + folded bn1 + relu --------------------------
    acc = jnp.zeros((M, planes), jnp.float32)
    for t in range(g * g):
        acc = acc + jnp.dot(x_slab(t // g, t % g), w1_ref[t],
                            preferred_element_type=jnp.float32)
    y1 = jnp.maximum(acc + b1_ref[...], 0.0)

    # ---- stage conv1 output with a 1-pixel zero halo in VMEM ----------------
    mid_ref[...] = jnp.zeros_like(mid_ref)
    mid_ref[1:Ho + 1, 1:Wo + 1, :] = y1.reshape(Ho, Wo, planes)

    # ---- conv2 (3x3, stride 1) + folded bn2 ----------------------------------
    acc = jnp.zeros((M, planes), jnp.float32)
    for t in range(9):
        ky, kx = t // 3, t % 3
        v = mid_ref[ky:ky + Ho, kx:kx + Wo, :].reshape(M, planes)
        acc = acc + jnp.dot(v.astype(jnp.bfloat16), w2_ref[t],
                            preferred_element_type=jnp.float32)
    out = acc + b2_ref[...]

    # ---- shortcut ------------------------------------------------------------
    d = 1 // s               # block offset of the centre tap == x[::s, ::s]
    if has_conv_sc:
        out = out + jnp.dot(x_slab(d, d), wsc_ref[...],
                            preferred_element_type=jnp.float32) + bsc_ref[...]
    else:
        out = out + x_slab(d, d).astype(jnp.float32)   # identity (K1 == planes)

    out_ref[...] = jnp.maximum(out, 0.0).reshape(Ho, Wo, planes).astype(out_ref.dtype)


# -----------------------------------------------------------------------------
# Plain-JAX glue: BN folding, weight regrouping, space-to-depth, wrapper
# -----------------------------------------------------------------------------
def _fold_bn(gamma, beta, mean, var, eps=1e-5):
    scale = gamma / jnp.sqrt(var + eps)
    shift = beta - mean * scale
    return scale, shift


def _pack_3x3(w_hwio, scale, stride):
    """Fold BN scale into a 3x3 HWIO weight and regroup it for the
    space-to-depth input layout: returns (g*g, s*s*Cin, Cout) bf16 where group
    (dy,dx) holds tap (ky,kx) = (dy*s+py, dx*s+px) in channel block (py,px)."""
    s = stride
    g = 2 // s + 1
    Cin, Cout = w_hwio.shape[2], w_hwio.shape[3]
    wf = w_hwio * scale                                   # fold BN scale (per Cout)
    packed = jnp.zeros((g, g, s, s, Cin, Cout), wf.dtype)
    for ky in range(3):
        for kx in range(3):
            packed = packed.at[ky // s, kx // s, ky % s, kx % s].set(wf[ky, kx])
    return packed.reshape(g * g, s * s * Cin, Cout).astype(jnp.bfloat16)


def _pack_1x1(w_hwio, scale, stride):
    """1x1 shortcut conv weight placed at phase (1%s, 1%s) of the space-to-depth
    channel layout (zeros elsewhere)."""
    s = stride
    Cin, Cout = w_hwio.shape[2], w_hwio.shape[3]
    wf = w_hwio[0, 0] * scale
    packed = jnp.zeros((s, s, Cin, Cout), wf.dtype).at[1 % s, 1 % s].set(wf)
    return packed.reshape(s * s * Cin, Cout).astype(jnp.bfloat16)


def basic_block_forward(x_nchw, params, stride):
    """Fused-Pallas implementation of BasicBlock.forward.  NCHW f32 in/out."""
    assert stride in (1, 2)
    s = stride
    x = jnp.transpose(x_nchw, (0, 2, 3, 1)).astype(jnp.float32)   # -> NHWC
    N, H, W, Cin = x.shape
    planes = params["w1"].shape[-1]

    Ho = (H - 1) // s + 1
    Wo = (W - 1) // s + 1
    g = 2 // s + 1
    Hb, Wb = Ho + g - 1, Wo + g - 1
    K1 = s * s * Cin

    # zero-pad (1 top/left, enough bottom/right) then space-to-depth for stride s
    xp = jnp.pad(x, ((0, 0), (1, Hb * s - H - 1), (1, Wb * s - W - 1), (0, 0)))
    xs = xp.reshape(N, Hb, s, Wb, s, Cin).transpose(0, 1, 3, 2, 4, 5)
    xs = xs.reshape(N, Hb, Wb, K1).astype(jnp.bfloat16)

    s1, b1 = _fold_bn(*params["bn1"])
    s2, b2 = _fold_bn(*params["bn2"])
    w1g = _pack_3x3(params["w1"], s1, s)      # (g*g, K1, planes) bf16
    w2g = _pack_3x3(params["w2"], s2, 1)      # (9, planes, planes) bf16

    has_conv_sc = "wsc" in params
    in_specs = [
        pl.BlockSpec((None, Hb, Wb, K1), lambda n: (n, 0, 0, 0)),
        pl.BlockSpec((g * g, K1, planes), lambda n: (0, 0, 0)),
        pl.BlockSpec((1, planes), lambda n: (0, 0)),
        pl.BlockSpec((9, planes, planes), lambda n: (0, 0, 0)),
        pl.BlockSpec((1, planes), lambda n: (0, 0)),
    ]
    args = [xs, w1g, b1.reshape(1, planes), w2g, b2.reshape(1, planes)]
    if has_conv_sc:
        ssc, bsc = _fold_bn(*params["bnsc"])
        wscg = _pack_1x1(params["wsc"], ssc, s)
        in_specs += [pl.BlockSpec((K1, planes), lambda n: (0, 0)),
                     pl.BlockSpec((1, planes), lambda n: (0, 0))]
        args += [wscg, bsc.reshape(1, planes)]
    else:
        assert Cin == planes and s == 1       # identity shortcut invariant

    kernel = functools.partial(_basic_block_kernel, stride=s, Ho=Ho, Wo=Wo,
                               planes=planes, has_conv_sc=has_conv_sc)

    macs = N * Ho * Wo * (g * g * K1 * planes + 9 * planes * planes
                          + (K1 * planes if has_conv_sc else 0))
    bytes_accessed = int(sum(a.size * a.dtype.itemsize for a in args)
                         + N * Ho * Wo * planes * 4)

    out = pl.pallas_call(
        kernel,
        out_shape=jax.ShapeDtypeStruct((N, Ho, Wo, planes), jnp.float32),
        grid=(N,),
        in_specs=in_specs,
        out_specs=pl.BlockSpec((None, Ho, Wo, planes), lambda n: (n, 0, 0, 0)),
        scratch_shapes=[pltpu.VMEM((Ho + 2, Wo + 2, planes), jnp.float32)],
        compiler_params=pltpu.CompilerParams(
            dimension_semantics=("parallel",)),
        cost_estimate=pl.CostEstimate(flops=2 * macs, transcendentals=0,
                                      bytes_accessed=bytes_accessed),
    )(*args)

    return jnp.transpose(out, (0, 3, 1, 2))   # -> NCHW


# -----------------------------------------------------------------------------
# Parameter construction + pure-JAX reference (lax.conv) for correctness check
# -----------------------------------------------------------------------------
def init_basic_block_params(key, in_planes, planes, stride):
    ks = jax.random.split(key, 8)
    p = {
        # conv weights stored HWIO: (kH, kW, Cin, Cout)
        "w1": 0.1 * jax.random.normal(ks[0], (3, 3, in_planes, planes), jnp.float32),
        "w2": 0.1 * jax.random.normal(ks[1], (3, 3, planes, planes), jnp.float32),
        "bn1": (1.0 + 0.1 * jax.random.normal(ks[2], (planes,), jnp.float32),   # gamma
                0.1 * jax.random.normal(ks[3], (planes,), jnp.float32),         # beta
                0.1 * jax.random.normal(ks[4], (planes,), jnp.float32),         # running mean
                0.5 + jax.random.uniform(ks[5], (planes,), jnp.float32)),       # running var
        "bn2": (1.0 + 0.1 * jax.random.normal(ks[6], (planes,), jnp.float32),
                0.1 * jax.random.normal(ks[7], (planes,), jnp.float32),
                jnp.zeros((planes,), jnp.float32),
                jnp.ones((planes,), jnp.float32)),
    }
    if stride != 1 or in_planes != planes:
        ksc = jax.random.split(ks[0], 3)
        p["wsc"] = 0.1 * jax.random.normal(ksc[0], (1, 1, in_planes, planes), jnp.float32)
        p["bnsc"] = (1.0 + 0.1 * jax.random.normal(ksc[1], (planes,), jnp.float32),
                     0.1 * jax.random.normal(ksc[2], (planes,), jnp.float32),
                     jnp.zeros((planes,), jnp.float32),
                     jnp.ones((planes,), jnp.float32))
    return p


def basic_block_reference(x_nchw, params, stride):
    x = jnp.transpose(x_nchw, (0, 2, 3, 1))
    dn = ("NHWC", "HWIO", "NHWC")

    def conv(x, w, s, pad):
        return jax.lax.conv_general_dilated(
            x, w, window_strides=(s, s), padding=pad, dimension_numbers=dn,
            precision=jax.lax.Precision.HIGHEST)

    def bn(x, gamma, beta, mean, var, eps=1e-5):
        return (x - mean) / jnp.sqrt(var + eps) * gamma + beta

    out = jax.nn.relu(bn(conv(x, params["w1"], stride, ((1, 1), (1, 1))), *params["bn1"]))
    out = bn(conv(out, params["w2"], 1, ((1, 1), (1, 1))), *params["bn2"])
    if "wsc" in params:
        sc = bn(conv(x, params["wsc"], stride, "VALID"), *params["bnsc"])
    else:
        sc = x
    out = jax.nn.relu(out + sc)
    return jnp.transpose(out, (0, 3, 1, 2))


if __name__ == "__main__":
    key = jax.random.PRNGKey(0)
    k1, k2, k3, k4 = jax.random.split(key, 4)

    fwd = jax.jit(basic_block_forward, static_argnums=(2,))

    # Case 1: stride-2 block with conv shortcut (channels 4 -> 8), 16x16 input.
    x = jax.random.normal(k1, (2, 4, 16, 16), jnp.float32)        # NCHW
    params = init_basic_block_params(k2, 4, 8, 2)
    out = jax.block_until_ready(fwd(x, params, 2))
    ref = jax.block_until_ready(basic_block_reference(x, params, 2))
    np.testing.assert_allclose(np.asarray(out), np.asarray(ref), rtol=5e-2, atol=5e-2)

    # Case 2: stride-1 block with identity shortcut (8 channels), 8x8 input.
    x2 = jax.random.normal(k3, (2, 8, 8, 8), jnp.float32)
    params2 = init_basic_block_params(k4, 8, 8, 1)
    out2 = jax.block_until_ready(fwd(x2, params2, 1))
    ref2 = jax.block_until_ready(basic_block_reference(x2, params2, 1))
    np.testing.assert_allclose(np.asarray(out2), np.asarray(ref2), rtol=5e-2, atol=5e-2)

    print("KERNEL_OK")
</pallas_src>

<mosaic_0001>
module attributes {stable_mosaic.version = 11 : i64} {
  func.func @_basic_block_kernel(%arg0: i32, %arg1: memref<1x9x9x16xbf16, #tpu.memory_space<vmem>>, %arg2: memref<4x16x8xbf16, #tpu.memory_space<vmem>>, %arg3: memref<1x8xf32, #tpu.memory_space<vmem>>, %arg4: memref<9x8x8xbf16, #tpu.memory_space<vmem>>, %arg5: memref<1x8xf32, #tpu.memory_space<vmem>>, %arg6: memref<16x8xbf16, #tpu.memory_space<vmem>>, %arg7: memref<1x8xf32, #tpu.memory_space<vmem>>, %arg8: memref<1x8x8x8xf32, #tpu.memory_space<vmem>>, %arg9: memref<10x10x8xf32, #tpu.memory_space<vmem>>) attributes {dimension_semantics = [#tpu.dimension_semantics<parallel>], iteration_bounds = array<i64: 2>, scalar_prefetch = 0 : i64, scratch_operands = 1 : i64, tpu.core_type = #tpu.core_type<tc>, window_params = [{transform_indices = @transform_0, window_bounds = array<i64: 1, 9, 9, 16>}, {pipeline_mode = #tpu.pipeline_mode<synchronous>, transform_indices = @transform_1, window_bounds = array<i64: 4, 16, 8>}, {pipeline_mode = #tpu.pipeline_mode<synchronous>, transform_indices = @transform_2, window_bounds = array<i64: 1, 8>}, {pipeline_mode = #tpu.pipeline_mode<synchronous>, transform_indices = @transform_3, window_bounds = array<i64: 9, 8, 8>}, {pipeline_mode = #tpu.pipeline_mode<synchronous>, transform_indices = @transform_4, window_bounds = array<i64: 1, 8>}, {pipeline_mode = #tpu.pipeline_mode<synchronous>, transform_indices = @transform_5, window_bounds = array<i64: 16, 8>}, {pipeline_mode = #tpu.pipeline_mode<synchronous>, transform_indices = @transform_6, window_bounds = array<i64: 1, 8>}, {transform_indices = @transform_7, window_bounds = array<i64: 1, 8, 8, 8>}]} {
    %cst = arith.constant 0.000000e+00 : f32
    %0 = vector.broadcast %cst : f32 to vector<64x8xf32>
    %c0 = arith.constant 0 : index
    %c0_0 = arith.constant 0 : index
    %c0_1 = arith.constant 0 : index
    %c0_2 = arith.constant 0 : index
    %1 = vector.load %arg1[%c0, %c0_0, %c0_1, %c0_2] : memref<1x9x9x16xbf16, #tpu.memory_space<vmem>>, vector<1x8x8x16xbf16>
    %2 = vector.shape_cast %1 : vector<1x8x8x16xbf16> to vector<8x8x16xbf16>
    %3 = vector.shape_cast %2 : vector<8x8x16xbf16> to vector<64x16xbf16>
    %c0_3 = arith.constant 0 : index
    %c0_4 = arith.constant 0 : index
    %c0_5 = arith.constant 0 : index
    %4 = vector.load %arg2[%c0_3, %c0_4, %c0_5] : memref<4x16x8xbf16, #tpu.memory_space<vmem>>, vector<1x16x8xbf16>
    %5 = vector.shape_cast %4 : vector<1x16x8xbf16> to vector<16x8xbf16>
    %cst_6 = arith.constant dense<0.000000e+00> : vector<64x8xf32>
    %6 = tpu.matmul %3, %5, %cst_6 {dimension_numbers = #tpu.dot_dimension_numbers<[1], [0], [0], [1], [0, 0, 1, 1], [], []>} : vector<64x16xbf16>, vector<16x8xbf16>, vector<64x8xf32> -> vector<64x8xf32>
    %7 = arith.addf %0, %6 : vector<64x8xf32>
    %c0_7 = arith.constant 0 : index
    %c0_8 = arith.constant 0 : index
    %c1 = arith.constant 1 : index
    %c0_9 = arith.constant 0 : index
    %8 = vector.load %arg1[%c0_7, %c0_8, %c1, %c0_9] : memref<1x9x9x16xbf16, #tpu.memory_space<vmem>>, vector<1x8x8x16xbf16>
    %9 = vector.shape_cast %8 : vector<1x8x8x16xbf16> to vector<8x8x16xbf16>
    %10 = vector.shape_cast %9 : vector<8x8x16xbf16> to vector<64x16xbf16>
    %c1_10 = arith.constant 1 : index
    %c0_11 = arith.constant 0 : index
    %c0_12 = arith.constant 0 : index
    %11 = vector.load %arg2[%c1_10, %c0_11, %c0_12] : memref<4x16x8xbf16, #tpu.memory_space<vmem>>, vector<1x16x8xbf16>
    %12 = vector.shape_cast %11 : vector<1x16x8xbf16> to vector<16x8xbf16>
    %cst_13 = arith.constant dense<0.000000e+00> : vector<64x8xf32>
    %13 = tpu.matmul %10, %12, %cst_13 {dimension_numbers = #tpu.dot_dimension_numbers<[1], [0], [0], [1], [0, 0, 1, 1], [], []>} : vector<64x16xbf16>, vector<16x8xbf16>, vector<64x8xf32> -> vector<64x8xf32>
    %14 = arith.addf %7, %13 : vector<64x8xf32>
    %c0_14 = arith.constant 0 : index
    %c1_15 = arith.constant 1 : index
    %c0_16 = arith.constant 0 : index
    %c0_17 = arith.constant 0 : index
    %15 = vector.load %arg1[%c0_14, %c1_15, %c0_16, %c0_17] : memref<1x9x9x16xbf16, #tpu.memory_space<vmem>>, vector<1x8x8x16xbf16>
    %16 = vector.shape_cast %15 : vector<1x8x8x16xbf16> to vector<8x8x16xbf16>
    %17 = vector.shape_cast %16 : vector<8x8x16xbf16> to vector<64x16xbf16>
    %c2 = arith.constant 2 : index
    %c0_18 = arith.constant 0 : index
    %c0_19 = arith.constant 0 : index
    %18 = vector.load %arg2[%c2, %c0_18, %c0_19] : memref<4x16x8xbf16, #tpu.memory_space<vmem>>, vector<1x16x8xbf16>
    %19 = vector.shape_cast %18 : vector<1x16x8xbf16> to vector<16x8xbf16>
    %cst_20 = arith.constant dense<0.000000e+00> : vector<64x8xf32>
    %20 = tpu.matmul %17, %19, %cst_20 {dimension_numbers = #tpu.dot_dimension_numbers<[1], [0], [0], [1], [0, 0, 1, 1], [], []>} : vector<64x16xbf16>, vector<16x8xbf16>, vector<64x8xf32> -> vector<64x8xf32>
    %21 = arith.addf %14, %20 : vector<64x8xf32>
    %c0_21 = arith.constant 0 : index
    %c1_22 = arith.constant 1 : index
    %c1_23 = arith.constant 1 : index
    %c0_24 = arith.constant 0 : index
    %22 = vector.load %arg1[%c0_21, %c1_22, %c1_23, %c0_24] : memref<1x9x9x16xbf16, #tpu.memory_space<vmem>>, vector<1x8x8x16xbf16>
    %23 = vector.shape_cast %22 : vector<1x8x8x16xbf16> to vector<8x8x16xbf16>
    %24 = vector.shape_cast %23 : vector<8x8x16xbf16> to vector<64x16xbf16>
    %c3 = arith.constant 3 : index
    %c0_25 = arith.constant 0 : index
    %c0_26 = arith.constant 0 : index
    %25 = vector.load %arg2[%c3, %c0_25, %c0_26] : memref<4x16x8xbf16, #tpu.memory_space<vmem>>, vector<1x16x8xbf16>
    %26 = vector.shape_cast %25 : vector<1x16x8xbf16> to vector<16x8xbf16>
    %cst_27 = arith.constant dense<0.000000e+00> : vector<64x8xf32>
    %27 = tpu.matmul %24, %26, %cst_27 {dimension_numbers = #tpu.dot_dimension_numbers<[1], [0], [0], [1], [0, 0, 1, 1], [], []>} : vector<64x16xbf16>, vector<16x8xbf16>, vector<64x8xf32> -> vector<64x8xf32>
    %28 = arith.addf %21, %27 : vector<64x8xf32>
    %c0_28 = arith.constant 0 : index
    %c0_29 = arith.constant 0 : index
    %29 = vector.load %arg3[%c0_28, %c0_29] : memref<1x8xf32, #tpu.memory_space<vmem>>, vector<1x8xf32>
    %30 = vector.broadcast %29 : vector<1x8xf32> to vector<64x8xf32>
    %31 = arith.addf %28, %30 : vector<64x8xf32>
    %cst_30 = arith.constant 0.000000e+00 : f32
    %32 = vector.broadcast %cst_30 : f32 to vector<64x8xf32>
    %33 = arith.maximumf %31, %32 : vector<64x8xf32>
    %cst_31 = arith.constant 0.000000e+00 : f32
    %34 = vector.broadcast %cst_31 : f32 to vector<10x10x8xf32>
    %c0_32 = arith.constant 0 : index
    %c0_33 = arith.constant 0 : index
    %c0_34 = arith.constant 0 : index
    %35 = vector.load %arg9[%c0_32, %c0_33, %c0_34] : memref<10x10x8xf32, #tpu.memory_space<vmem>>, vector<10x10x8xf32>
    tpu.vector_store %arg9[%c0_32, %c0_33, %c0_34], %34 {strides = array<i32>} : memref<10x10x8xf32, #tpu.memory_space<vmem>>, vector<10x10x8xf32>,
    %36 = vector.shape_cast %33 : vector<64x8xf32> to vector<8x8x8xf32>
    %c1_35 = arith.constant 1 : index
    %c1_36 = arith.constant 1 : index
    %c0_37 = arith.constant 0 : index
    %37 = vector.load %arg9[%c1_35, %c1_36, %c0_37] : memref<10x10x8xf32, #tpu.memory_space<vmem>>, vector<8x8x8xf32>
    tpu.vector_store %arg9[%c1_35, %c1_36, %c0_37], %36 {strides = array<i32>} : memref<10x10x8xf32, #tpu.memory_space<vmem>>, vector<8x8x8xf32>,
    %cst_38 = arith.constant 0.000000e+00 : f32
    %38 = vector.broadcast %cst_38 : f32 to vector<64x8xf32>
    %c0_39 = arith.constant 0 : index
    %c0_40 = arith.constant 0 : index
    %c0_41 = arith.constant 0 : index
    %39 = vector.load %arg9[%c0_39, %c0_40, %c0_41] : memref<10x10x8xf32, #tpu.memory_space<vmem>>, vector<8x8x8xf32>
    %40 = vector.shape_cast %39 : vector<8x8x8xf32> to vector<64x8xf32>
    %41 = arith.truncf %40 : vector<64x8xf32> to vector<64x8xbf16>
    %c0_42 = arith.constant 0 : index
    %c0_43 = arith.constant 0 : index
    %c0_44 = arith.constant 0 : index
    %42 = vector.load %arg4[%c0_42, %c0_43, %c0_44] : memref<9x8x8xbf16, #tpu.memory_space<vmem>>, vector<1x8x8xbf16>
    %43 = vector.shape_cast %42 : vector<1x8x8xbf16> to vector<8x8xbf16>
    %cst_45 = arith.constant dense<0.000000e+00> : vector<64x8xf32>
    %44 = tpu.matmul %41, %43, %cst_45 {dimension_numbers = #tpu.dot_dimension_numbers<[1], [0], [0], [1], [0, 0, 1, 1], [], []>} : vector<64x8xbf16>, vector<8x8xbf16>, vector<64x8xf32> -> vector<64x8xf32>
    %45 = arith.addf %38, %44 : vector<64x8xf32>
    %c0_46 = arith.constant 0 : index
    %c1_47 = arith.constant 1 : index
    %c0_48 = arith.constant 0 : index
    %46 = vector.load %arg9[%c0_46, %c1_47, %c0_48] : memref<10x10x8xf32, #tpu.memory_space<vmem>>, vector<8x8x8xf32>
    %47 = vector.shape_cast %46 : vector<8x8x8xf32> to vector<64x8xf32>
    %48 = arith.truncf %47 : vector<64x8xf32> to vector<64x8xbf16>
    %c1_49 = arith.constant 1 : index
    %c0_50 = arith.constant 0 : index
    %c0_51 = arith.constant 0 : index
    %49 = vector.load %arg4[%c1_49, %c0_50, %c0_51] : memref<9x8x8xbf16, #tpu.memory_space<vmem>>, vector<1x8x8xbf16>
    %50 = vector.shape_cast %49 : vector<1x8x8xbf16> to vector<8x8xbf16>
    %cst_52 = arith.constant dense<0.000000e+00> : vector<64x8xf32>
    %51 = tpu.matmul %48, %50, %cst_52 {dimension_numbers = #tpu.dot_dimension_numbers<[1], [0], [0], [1], [0, 0, 1, 1], [], []>} : vector<64x8xbf16>, vector<8x8xbf16>, vector<64x8xf32> -> vector<64x8xf32>
    %52 = arith.addf %45, %51 : vector<64x8xf32>
    %c0_53 = arith.constant 0 : index
    %c2_54 = arith.constant 2 : index
    %c0_55 = arith.constant 0 : index
    %53 = vector.load %arg9[%c0_53, %c2_54, %c0_55] : memref<10x10x8xf32, #tpu.memory_space<vmem>>, vector<8x8x8xf32>
    %54 = vector.shape_cast %53 : vector<8x8x8xf32> to vector<64x8xf32>
    %55 = arith.truncf %54 : vector<64x8xf32> to vector<64x8xbf16>
    %c2_56 = arith.constant 2 : index
    %c0_57 = arith.constant 0 : index
    %c0_58 = arith.constant 0 : index
    %56 = vector.load %arg4[%c2_56, %c0_57, %c0_58] : memref<9x8x8xbf16, #tpu.memory_space<vmem>>, vector<1x8x8xbf16>
    %57 = vector.shape_cast %56 : vector<1x8x8xbf16> to vector<8x8xbf16>
    %cst_59 = arith.constant dense<0.000000e+00> : vector<64x8xf32>
    %58 = tpu.matmul %55, %57, %cst_59 {dimension_numbers = #tpu.dot_dimension_numbers<[1], [0], [0], [1], [0, 0, 1, 1], [], []>} : vector<64x8xbf16>, vector<8x8xbf16>, vector<64x8xf32> -> vector<64x8xf32>
    %59 = arith.addf %52, %58 : vector<64x8xf32>
    %c1_60 = arith.constant 1 : index
    %c0_61 = arith.constant 0 : index
    %c0_62 = arith.constant 0 : index
    %60 = vector.load %arg9[%c1_60, %c0_61, %c0_62] : memref<10x10x8xf32, #tpu.memory_space<vmem>>, vector<8x8x8xf32>
    %61 = vector.shape_cast %60 : vector<8x8x8xf32> to vector<64x8xf32>
    %62 = arith.truncf %61 : vector<64x8xf32> to vector<64x8xbf16>
    %c3_63 = arith.constant 3 : index
    %c0_64 = arith.constant 0 : index
    %c0_65 = arith.constant 0 : index
    %63 = vector.load %arg4[%c3_63, %c0_64, %c0_65] : memref<9x8x8xbf16, #tpu.memory_space<vmem>>, vector<1x8x8xbf16>
    %64 = vector.shape_cast %63 : vector<1x8x8xbf16> to vector<8x8xbf16>
    %cst_66 = arith.constant dense<0.000000e+00> : vector<64x8xf32>
    %65 = tpu.matmul %62, %64, %cst_66 {dimension_numbers = #tpu.dot_dimension_numbers<[1], [0], [0], [1], [0, 0, 1, 1], [], []>} : vector<64x8xbf16>, vector<8x8xbf16>, vector<64x8xf32> -> vector<64x8xf32>
    %66 = arith.addf %59, %65 : vector<64x8xf32>
    %c1_67 = arith.constant 1 : index
    %c1_68 = arith.constant 1 : index
    %c0_69 = arith.constant 0 : index
    %67 = vector.load %arg9[%c1_67, %c1_68, %c0_69] : memref<10x10x8xf32, #tpu.memory_space<vmem>>, vector<8x8x8xf32>
    %68 = vector.shape_cast %67 : vector<8x8x8xf32> to vector<64x8xf32>
    %69 = arith.truncf %68 : vector<64x8xf32> to vector<64x8xbf16>
    %c4 = arith.constant 4 : index
    %c0_70 = arith.constant 0 : index
    %c0_71 = arith.constant 0 : index
    %70 = vector.load %arg4[%c4, %c0_70, %c0_71] : memref<9x8x8xbf16, #tpu.memory_space<vmem>>, vector<1x8x8xbf16>
    %71 = vector.shape_cast %70 : vector<1x8x8xbf16> to vector<8x8xbf16>
    %cst_72 = arith.constant dense<0.000000e+00> : vector<64x8xf32>
    %72 = tpu.matmul %69, %71, %cst_72 {dimension_numbers = #tpu.dot_dimension_numbers<[1], [0], [0], [1], [0, 0, 1, 1], [], []>} : vector<64x8xbf16>, vector<8x8xbf16>, vector<64x8xf32> -> vector<64x8xf32>
    %73 = arith.addf %66, %72 : vector<64x8xf32>
    %c1_73 = arith.constant 1 : index
    %c2_74 = arith.constant 2 : index
    %c0_75 = arith.constant 0 : index
    %74 = vector.load %arg9[%c1_73, %c2_74, %c0_75] : memref<10x10x8xf32, #tpu.memory_space<vmem>>, vector<8x8x8xf32>
    %75 = vector.shape_cast %74 : vector<8x8x8xf32> to vector<64x8xf32>
    %76 = arith.truncf %75 : vector<64x8xf32> to vector<64x8xbf16>
    %c5 = arith.constant 5 : index
    %c0_76 = arith.constant 0 : index
    %c0_77 = arith.constant 0 : index
    %77 = vector.load %arg4[%c5, %c0_76, %c0_77] : memref<9x8x8xbf16, #tpu.memory_space<vmem>>, vector<1x8x8xbf16>
    %78 = vector.shape_cast %77 : vector<1x8x8xbf16> to vector<8x8xbf16>
    %cst_78 = arith.constant dense<0.000000e+00> : vector<64x8xf32>
    %79 = tpu.matmul %76, %78, %cst_78 {dimension_numbers = #tpu.dot_dimension_numbers<[1], [0], [0], [1], [0, 0, 1, 1], [], []>} : vector<64x8xbf16>, vector<8x8xbf16>, vector<64x8xf32> -> vector<64x8xf32>
    %80 = arith.addf %73, %79 : vector<64x8xf32>
    %c2_79 = arith.constant 2 : index
    %c0_80 = arith.constant 0 : index
    %c0_81 = arith.constant 0 : index
    %81 = vector.load %arg9[%c2_79, %c0_80, %c0_81] : memref<10x10x8xf32, #tpu.memory_space<vmem>>, vector<8x8x8xf32>
    %82 = vector.shape_cast %81 : vector<8x8x8xf32> to vector<64x8xf32>
    %83 = arith.truncf %82 : vector<64x8xf32> to vector<64x8xbf16>
    %c6 = arith.constant 6 : index
    %c0_82 = arith.constant 0 : index
    %c0_83 = arith.constant 0 : index
    %84 = vector.load %arg4[%c6, %c0_82, %c0_83] : memref<9x8x8xbf16, #tpu.memory_space<vmem>>, vector<1x8x8xbf16>
    %85 = vector.shape_cast %84 : vector<1x8x8xbf16> to vector<8x8xbf16>
    %cst_84 = arith.constant dense<0.000000e+00> : vector<64x8xf32>
    %86 = tpu.matmul %83, %85, %cst_84 {dimension_numbers = #tpu.dot_dimension_numbers<[1], [0], [0], [1], [0, 0, 1, 1], [], []>} : vector<64x8xbf16>, vector<8x8xbf16>, vector<64x8xf32> -> vector<64x8xf32>
    %87 = arith.addf %80, %86 : vector<64x8xf32>
    %c2_85 = arith.constant 2 : index
    %c1_86 = arith.constant 1 : index
    %c0_87 = arith.constant 0 : index
    %88 = vector.load %arg9[%c2_85, %c1_86, %c0_87] : memref<10x10x8xf32, #tpu.memory_space<vmem>>, vector<8x8x8xf32>
    %89 = vector.shape_cast %88 : vector<8x8x8xf32> to vector<64x8xf32>
    %90 = arith.truncf %89 : vector<64x8xf32> to vector<64x8xbf16>
    %c7 = arith.constant 7 : index
    %c0_88 = arith.constant 0 : index
    %c0_89 = arith.constant 0 : index
    %91 = vector.load %arg4[%c7, %c0_88, %c0_89] : memref<9x8x8xbf16, #tpu.memory_space<vmem>>, vector<1x8x8xbf16>
    %92 = vector.shape_cast %91 : vector<1x8x8xbf16> to vector<8x8xbf16>
    %cst_90 = arith.constant dense<0.000000e+00> : vector<64x8xf32>
    %93 = tpu.matmul %90, %92, %cst_90 {dimension_numbers = #tpu.dot_dimension_numbers<[1], [0], [0], [1], [0, 0, 1, 1], [], []>} : vector<64x8xbf16>, vector<8x8xbf16>, vector<64x8xf32> -> vector<64x8xf32>
    %94 = arith.addf %87, %93 : vector<64x8xf32>
    %c2_91 = arith.constant 2 : index
    %c2_92 = arith.constant 2 : index
    %c0_93 = arith.constant 0 : index
    %95 = vector.load %arg9[%c2_91, %c2_92, %c0_93] : memref<10x10x8xf32, #tpu.memory_space<vmem>>, vector<8x8x8xf32>
    %96 = vector.shape_cast %95 : vector<8x8x8xf32> to vector<64x8xf32>
    %97 = arith.truncf %96 : vector<64x8xf32> to vector<64x8xbf16>
    %c8 = arith.constant 8 : index
    %c0_94 = arith.constant 0 : index
    %c0_95 = arith.constant 0 : index
    %98 = vector.load %arg4[%c8, %c0_94, %c0_95] : memref<9x8x8xbf16, #tpu.memory_space<vmem>>, vector<1x8x8xbf16>
    %99 = vector.shape_cast %98 : vector<1x8x8xbf16> to vector<8x8xbf16>
    %cst_96 = arith.constant dense<0.000000e+00> : vector<64x8xf32>
    %100 = tpu.matmul %97, %99, %cst_96 {dimension_numbers = #tpu.dot_dimension_numbers<[1], [0], [0], [1], [0, 0, 1, 1], [], []>} : vector<64x8xbf16>, vector<8x8xbf16>, vector<64x8xf32> -> vector<64x8xf32>
    %101 = arith.addf %94, %100 : vector<64x8xf32>
    %c0_97 = arith.constant 0 : index
    %c0_98 = arith.constant 0 : index
    %102 = vector.load %arg5[%c0_97, %c0_98] : memref<1x8xf32, #tpu.memory_space<vmem>>, vector<1x8xf32>
    %103 = vector.broadcast %102 : vector<1x8xf32> to vector<64x8xf32>
    %104 = arith.addf %101, %103 : vector<64x8xf32>
    %c0_99 = arith.constant 0 : index
    %c0_100 = arith.constant 0 : index
    %c0_101 = arith.constant 0 : index
    %c0_102 = arith.constant 0 : index
    %105 = vector.load %arg1[%c0_99, %c0_100, %c0_101, %c0_102] : memref<1x9x9x16xbf16, #tpu.memory_space<vmem>>, vector<1x8x8x16xbf16>
    %106 = vector.shape_cast %105 : vector<1x8x8x16xbf16> to vector<8x8x16xbf16>
    %107 = vector.shape_cast %106 : vector<8x8x16xbf16> to vector<64x16xbf16>
    %c0_103 = arith.constant 0 : index
    %c0_104 = arith.constant 0 : index
    %108 = vector.load %arg6[%c0_103, %c0_104] : memref<16x8xbf16, #tpu.memory_space<vmem>>, vector<16x8xbf16>
    %cst_105 = arith.constant dense<0.000000e+00> : vector<64x8xf32>
    %109 = tpu.matmul %107, %108, %cst_105 {dimension_numbers = #tpu.dot_dimension_numbers<[1], [0], [0], [1], [0, 0, 1, 1], [], []>} : vector<64x16xbf16>, vector<16x8xbf16>, vector<64x8xf32> -> vector<64x8xf32>
    %110 = arith.addf %104, %109 : vector<64x8xf32>
    %c0_106 = arith.constant 0 : index
    %c0_107 = arith.constant 0 : index
    %111 = vector.load %arg7[%c0_106, %c0_107] : memref<1x8xf32, #tpu.memory_space<vmem>>, vector<1x8xf32>
    %112 = vector.broadcast %111 : vector<1x8xf32> to vector<64x8xf32>
    %113 = arith.addf %110, %112 : vector<64x8xf32>
    %cst_108 = arith.constant 0.000000e+00 : f32
    %114 = vector.broadcast %cst_108 : f32 to vector<64x8xf32>
    %115 = arith.maximumf %113, %114 : vector<64x8xf32>
    %116 = vector.shape_cast %115 : vector<64x8xf32> to vector<8x8x8xf32>
    %c0_109 = arith.constant 0 : index
    %c0_110 = arith.constant 0 : index
    %c0_111 = arith.constant 0 : index
    %c0_112 = arith.constant 0 : index
    %117 = vector.load %arg8[%c0_109, %c0_110, %c0_111, %c0_112] : memref<1x8x8x8xf32, #tpu.memory_space<vmem>>, vector<1x8x8x8xf32>
    %118 = vector.shape_cast %117 : vector<1x8x8x8xf32> to vector<8x8x8xf32>
    %119 = vector.shape_cast %116 : vector<8x8x8xf32> to vector<1x8x8x8xf32>
    tpu.vector_store %arg8[%c0_109, %c0_110, %c0_111, %c0_112], %119 {strides = array<i32>} : memref<1x8x8x8xf32, #tpu.memory_space<vmem>>, vector<1x8x8x8xf32>,
    return
  }
  func.func @transform_0(%arg0: i32) -> (i32, i32, i32, i32) {
    %c0_i32 = arith.constant 0 : i32
    %c0_i32_0 = arith.constant 0 : i32
    %c0_i32_1 = arith.constant 0 : i32
    %c0_i32_2 = arith.constant 0 : i32
    return %arg0, %c0_i32, %c0_i32_0, %c0_i32_1 : i32, i32, i32, i32
  }
  func.func @transform_1(%arg0: i32) -> (i32, i32, i32) {
    %c0_i32 = arith.constant 0 : i32
    %c0_i32_0 = arith.constant 0 : i32
    %c0_i32_1 = arith.constant 0 : i32
    %c0_i32_2 = arith.constant 0 : i32
    return %c0_i32, %c0_i32_0, %c0_i32_1 : i32, i32, i32
  }
  func.func @transform_2(%arg0: i32) -> (i32, i32) {
    %c0_i32 = arith.constant 0 : i32
    %c0_i32_0 = arith.constant 0 : i32
    %c0_i32_1 = arith.constant 0 : i32
    return %c0_i32, %c0_i32_0 : i32, i32
  }
  func.func @transform_3(%arg0: i32) -> (i32, i32, i32) {
    %c0_i32 = arith.constant 0 : i32
    %c0_i32_0 = arith.constant 0 : i32
    %c0_i32_1 = arith.constant 0 : i32
    %c0_i32_2 = arith.constant 0 : i32
    return %c0_i32, %c0_i32_0, %c0_i32_1 : i32, i32, i32
  }
  func.func @transform_4(%arg0: i32) -> (i32, i32) {
    %c0_i32 = arith.constant 0 : i32
    %c0_i32_0 = arith.constant 0 : i32
    %c0_i32_1 = arith.constant 0 : i32
    return %c0_i32, %c0_i32_0 : i32, i32
  }
  func.func @transform_5(%arg0: i32) -> (i32, i32) {
    %c0_i32 = arith.constant 0 : i32
    %c0_i32_0 = arith.constant 0 : i32
    %c0_i32_1 = arith.constant 0 : i32
    return %c0_i32, %c0_i32_0 : i32, i32
  }
  func.func @transform_6(%arg0: i32) -> (i32, i32) {
    %c0_i32 = arith.constant 0 : i32
    %c0_i32_0 = arith.constant 0 : i32
    %c0_i32_1 = arith.constant 0 : i32
    return %c0_i32, %c0_i32_0 : i32, i32
  }
  func.func @transform_7(%arg0: i32) -> (i32, i32, i32, i32) {
    %c0_i32 = arith.constant 0 : i32
    %c0_i32_0 = arith.constant 0 : i32
    %c0_i32_1 = arith.constant 0 : i32
    %c0_i32_2 = arith.constant 0 : i32
    return %arg0, %c0_i32, %c0_i32_0, %c0_i32_1 : i32, i32, i32, i32
  }
}

</mosaic_0001>

<bundles_post_ra>
// kernel: basic_block_forward.1
= control target key start
LH: loop header
LB: loop body
LE: loop exit
PB: predicated region body
PF: predicated region fallthrough
CT: control target
= control target key end

     0   :  { %s2683_s24 = smov 0   ;;  %s3015_s0 = inlined_call_operand.vmem [shape: bf16[2,9,9,16], index: 0, kind: input, shape index: {}]   ;;  %s3016_s1 = inlined_call_operand.vmem [shape: bf16[4,16,8], index: 1, kind: input, shape index: {}]   ;;  %s3017_s2 = inlined_call_operand.vmem [shape: f32[1,8], index: 2, kind: input, shape index: {}]   ;;  %s3018_s3 = inlined_call_operand.vmem [shape: bf16[9,8,8], index: 3, kind: input, shape index: {}]   ;;  %s3019_s4 = inlined_call_operand.vmem [shape: f32[1,8], index: 4, kind: input, shape index: {}]   ;;  %s3020_s5 = inlined_call_operand.vmem [shape: bf16[16,8], index: 5, kind: input, shape index: {}]   ;;  %s3021_s6 = inlined_call_operand.vmem [shape: f32[1,8], index: 6, kind: input, shape index: {}]   ;;  %s3022_s7 = inlined_call_operand.vmem [shape: f32[2,8,8,8], index: 7, kind: output, shape index: {}]  }
   0x1 LB: > { %s2151_s25 = sadd.s32 4294967295, %s2640_s24   ;;  %p2155_p0 = scmp.ge.s32.totalorder %s2640_s24, 1  ;;  %s2640_s24 = sphi %s2683_s24, %s17_s24  }
   0x2   : > { %p237_p1 = scmp.lt.s32.totalorder %s2640_s24, 3 }
   0x4   : > { %p238_p2 = pnand %p2155_p0, %p237_p1 }
   0x5   : > { %v2617_v0 = vld [vmem:[%s3016_s1 + $0x8] sm:$0xff] (!%p238_p2)   ;;  %p269_p3 = scmp.lt.s32.totalorder (!%p238_p2), %s2151_s25, 1  ;;  %v2697_v1 = vld [vmem:[%s3016_s1] sm:$0xff] (!%p238_p2)   ;;  %vm298_vm0 = vsmask.f32 (!%p238_p2), 3328  ;;  %vm434_vm2 = vcmask (!%p238_p2), 130048  }
   0x6   : > { %241 = sbr.rel (%p238_p2) target bundleno = 641 (0x281), region = 48  ;;  %2354 = vmatprep.subr.bf16.mxu0 (!%p238_p2), %v2617_v0  ;;  %vm299_vm1 = vsmask.f32 (!%p238_p2), 7440  ;;  %vm995_vm4 = vcmask (!%p238_p2), 64512   ;;  %vm997_vm5 = vcmask (!%p238_p2), 58368   ;;  %vm1065_vm6 = vcmask (!%p238_p2), 1043456  }
   0x7   : > { %2355 = vmatpush3.bf16.msra.mxu0 (!%p238_p2), %v2617_v0  ;;  %vm2737_vm3 = vmor (!%p238_p2), %vm298_vm0, %vm299_vm1  ;;  %v2226_v29 = vld [vmem:[%s3018_s3 + $0x4] sm:$0xf] (!%p238_p2) }
   0x8   : > { %2364 = vmatprep.subr.bf16.mxu0 (!%p238_p2), %v2697_v1 }
   0xd   : > { %s3026_s25 = smov (!%p269_p3, %s2151_s25), 1 }
   0xe   : > { %s2607_s30 = smul.u32 72, %s3026_s25  ;;  %s2283_s20 = sshll.u32 %s3026_s25, 6 }
   0xf   : > { %s2994_s23 = scalar_lea.vmem %s3022_s7, %s2283_s20 }
  0x10   : > { %s2706_s10 = scalar_lea.vmem %s3015_s0, %s2607_s30 }
  0x11   : > { %v2709_v2 = vld [vmem:[%s2706_s10] sm:$0xf]  ;;  %v2712_v3 = vld [vmem:[%s2706_s10 + $0x8] sm:$0xf]  ;;  %v290_v4 = vld [vmem:[%s2706_s10 + $0x4] sm:$0x1] }
  0x12   : > { %v291_v5 = vld [vmem:[%s2706_s10 + $0xc] sm:$0x1]  ;;  %v302_v6 = vshrl.u32 %v2709_v2, 16  ;;  %v305_v7 = vshll.u32 %v2709_v2, 16  ;;  %v311_v8 = vshll.u32 %v290_v4, 16  ;;  %v316_v9 = vshrl.u32 %v2712_v3, 16 }
  0x13   : > { %v319_v10 = vshll.u32 %v2712_v3, 16  ;;  %v325_v11 = vshll.u32 %v291_v5, 16  ;;  %v2721_v12 = vld [vmem:[%s2706_s10 + $0x10] sm:$0xf]  ;;  %v2724_v13 = vld [vmem:[%s2706_s10 + $0x18] sm:$0xf] }
  0x14   : > { %v304_v14 = vrot.slane %v302_v6, 4  ;;  %v307_v15 = vrot.slane %v305_v7, 5  ;;  %v313_v16 = vrot.slane %v311_v8, 5  ;;  %v318_v17 = vrot.slane %v316_v9, 4  ;;  %v292_v18 = vld [vmem:[%s2706_s10 + $0x14] sm:$0x1] }
  0x15   : > { %v321_v19 = vrot.slane %v319_v10, 5  ;;  %v327_v20 = vrot.slane %v325_v11, 5  ;;  %v293_v21 = vld [vmem:[%s2706_s10 + $0x1c] sm:$0x1]  ;;  %v330_v22 = vshrl.u32 %v2721_v12, 16  ;;  %v333_v23 = vshll.u32 %v2721_v12, 16 }
  0x16   : > { %v308_v24 = vor.u32 %v307_v15, %v304_v14  ;;  %v339_v25 = vshll.u32 %v292_v18, 16  ;;  %v344_v26 = vshrl.u32 %v2724_v13, 16  ;;  %v347_v27 = vshll.u32 %v2724_v13, 16  ;;  %v2733_v28 = vld [vmem:[%s2706_s10 + $0x20] sm:$0xf]  ;;  %v2620_v11 = vld [vmem:[%s3016_s1 + $0x10] sm:$0xff]  }
  0x17   : > { %v322_v30 = vor.u32 %v321_v19, %v318_v17  ;;  %v332_v31 = vrot.slane %v330_v22, 4  ;;  %v335_v32 = vrot.slane %v333_v23, 5  ;;  %v353_v33 = vshll.u32 %v293_v21, 16  ;;  %v2742_v34 = vld [vmem:[%s2706_s10 + $0x28] sm:$0xf] }
  0x18   : > { %v309_v35 = vrot.slane %v308_v24, 4  ;;  %v341_v36 = vrot.slane %v339_v25, 5  ;;  %v346_v37 = vrot.slane %v344_v26, 4  ;;  %v349_v38 = vrot.slane %v347_v27, 5  ;;  %v294_v39 = vld [vmem:[%s2706_s10 + $0x24] sm:$0x1] }
  0x19   : > { %v323_v40 = vrot.slane %v322_v30, 4  ;;  %v336_v41 = vor.u32 %v335_v32, %v332_v31  ;;  %v355_v42 = vrot.slane %v353_v33, 5  ;;  %v358_v43 = vshrl.u32 %v2733_v28, 16  ;;  %v295_v46 = vld [vmem:[%s2706_s10 + $0x2c] sm:$0x1] }
  0x1a   : > { %v314_v44 = vsel %vm2737_vm3, %v309_v35, %v313_v16  ;;  %v350_v45 = vor.u32 %v349_v38, %v346_v37  ;;  %v361_v47 = vshll.u32 %v2733_v28, 16  ;;  %v367_v48 = vshll.u32 %v294_v39, 16  ;;  %v2754_v53 = vld [vmem:[%s2706_s10 + $0x30] sm:$0xf]  ;;  %v2757_v57 = vld [vmem:[%s2706_s10 + $0x38] sm:$0xf] }
  0x1b   : > { %v328_v49 = vsel %vm2737_vm3, %v323_v40, %v327_v20  ;;  %v337_v50 = vrot.slane %v336_v41, 4  ;;  %v360_v51 = vrot.slane %v358_v43, 4  ;;  %v372_v52 = vshrl.u32 %v2742_v34, 16  ;;  %v296_v58 = vld [vmem:[%s2706_s10 + $0x34] sm:$0x1] }
  0x1c   : > { %v2161_v54 = vcombine.low %v314_v44, %v328_v49  ;;  %v351_v55 = vrot.slane %v350_v45, 4  ;;  %v363_v56 = vrot.slane %v361_v47, 5  ;;  %v375_v61 = vshll.u32 %v2742_v34, 16  ;;  %v297_v4 = vld [vmem:[%s2706_s10 + $0x3c] sm:$0x1] }
  0x1d   : > { %v342_v59 = vsel %vm2737_vm3, %v337_v50, %v341_v36  ;;  %v374_v60 = vrot.slane %v372_v52, 4  ;;  %v381_v62 = vshll.u32 %v295_v46, 16  ;;  %v386_v5 = vshrl.u32 %v2754_v53, 16  ;;  %v2198_v41 = vld [vmem:[%s2706_s10 + $0x8] sm:$0xf]  ;;  %v2625_v44 = vld [vmem:[%s3016_s1 + $0x18] sm:$0xff]  }
  0x1e   : > { %2356 = vmatprep.mubr.msk.bf16.mxu0 %vm434_vm2, %v2161_v54  ;;  %v356_v63 = vsel %vm2737_vm3, %v351_v55, %v355_v42  ;;  %v364_v0 = vor.u32 %v363_v56, %v360_v51  ;;  %v389_v6 = vshll.u32 %v2754_v53, 16  ;;  %v369_v8 = vrot.slane %v367_v48, 5  ;;  %v2200_v43 = vld [vmem:[%s2706_s10 + $0x10] sm:$0xf]  ;;  %v2201_v47 = vld [vmem:[%s2706_s10 + $0x14] sm:$0x1] }
  0x1f   : > { %v2162_v7 = vcombine.low %v342_v59, %v356_v63  ;;  %v377_v9 = vrot.slane %v375_v61, 5  ;;  %v395_v10 = vshll.u32 %v296_v58, 16  ;;  %v388_v15 = vrot.slane %v386_v5, 4  ;;  %v2202_v50 = vld [vmem:[%s2706_s10 + $0x18] sm:$0xf] }
  0x20   : > { %v365_v14 = vrot.slane %v364_v0, 4  ;;  %v391_v16 = vrot.slane %v389_v6, 5  ;;  %v400_v17 = vshrl.u32 %v2757_v57, 16  ;;  %v383_v19 = vrot.slane %v381_v62, 5  ;;  %v2624_v51 = vld [vmem:[%s2706_s10 + $0x8] ss:$8 sps:$4 sm:$0xff]  }
  0x21   : > { %2357 = vmatmul.mubr.msk.bf16.vlgmr.msra.gmra.mrb[0].mxu0 %vm434_vm2, %v2162_v7  ;;  %v378_v18 = vor.u32 %v377_v9, %v374_v60  ;;  %v403_v20 = vshll.u32 %v2757_v57, 16  ;;  %v409_v21 = vshll.u32 %v297_v4, 16  ;;  %v397_v26 = vrot.slane %v395_v10, 5  ;;  %v2204_v52 = vld [vmem:[%s2706_s10 + $0x20] sm:$0xf] }
  0x22   : > { %2365 = vmatpush3.bf16.msra.mxu0 %v2697_v1  ;;  %v392_v22 = vor.u32 %v391_v16, %v388_v15  ;;  %v402_v23 = vrot.slane %v400_v17, 4  ;;  %v370_v24 = vsel %vm2737_vm3, %v365_v14, %v369_v8  ;;  %v2170_v38 = vcombine.low %v2709_v2, %v2712_v3  ;;  %v2206_v59 = vld [vmem:[%s2706_s10 + $0x28] sm:$0xf]  ;;  %v2208_v60 = vld [vmem:[%s2706_s10 + $0x30] sm:$0xf] }
  0x23   : > { %v379_v25 = vrot.slane %v378_v18, 4  ;;  %v405_v27 = vrot.slane %v403_v20, 5  ;;  %2374 = vmatprep.subr.bf16.mxu0 %v2620_v11  ;;  %v411_v33 = vrot.slane %v409_v21, 5  ;;  %v2171_v40 = vcombine.low %v2721_v12, %v2724_v13  ;;  %v2199_v12 = vld [vmem:[%s2706_s10 + $0xc] sm:$0x1] }
  0x24   : > { %v393_v30 = vrot.slane %v392_v22, 4  ;;  %v2172_v42 = vcombine.low %v2733_v28, %v2742_v34  ;;  %v755_v2 = vshrl.u32 %v2198_v41, 16  ;;  %v758_v3 = vshll.u32 %v2198_v41, 16  ;;  %v2626_v63 = vld [vmem:[%s2706_s10 + $0x18] ss:$8 sps:$4 sm:$0xff]  }
  0x25   : > { %v384_v31 = vsel %vm2737_vm3, %v379_v25, %v383_v19  ;;  %v406_v32 = vor.u32 %v405_v27, %v402_v23  ;;  %v769_v45 = vshrl.u32 %v2200_v43, 16  ;;  %v772_v46 = vshll.u32 %v2200_v43, 16  ;;  %v2203_v10 = vld [vmem:[%s2706_s10 + $0x1c] sm:$0x1]  ;;  %v2205_v15 = vld [vmem:[%s2706_s10 + $0x24] sm:$0x1] }
  0x26   : > { %v2163_v35 = vcombine.low %v370_v24, %v384_v31  ;;  %v398_v1 = vsel %vm2737_vm3, %v393_v30, %v397_v26  ;;  %v757_v13 = vrot.slane %v755_v2, 4  ;;  %v760_v28 = vrot.slane %v758_v3, 5  ;;  %v2627_v19 = vld [vmem:[%s2706_s10 + $0x28] ss:$8 sps:$4 sm:$0xff]   ;;  %v2210_v20 = vld [vmem:[%s2706_s10 + $0x38] sm:$0xf] }
  0x27   : > { %v407_v36 = vrot.slane %v406_v32, 4  ;;  %v2173_v34 = vcombine.low %v2754_v53, %v2757_v57  ;;  %v771_v48 = vrot.slane %v769_v45, 4  ;;  %v774_v49 = vrot.slane %v772_v46, 5  ;;  %v2212_v25 = vld [vmem:[%s2706_s10 + $0x40] sm:$0xf] }
  0x28   : > { %2360 = vmatprep.mubr.msk.bf16.mxu0 %vm434_vm2, %v2163_v35  ;;  %v764_v54 = vshll.u32 %v2199_v12, 16  ;;  %v761_v55 = vor.u32 %v760_v28, %v757_v13  ;;  %v778_v56 = vshll.u32 %v2201_v47, 16  ;;  %v783_v58 = vshrl.u32 %v2202_v50, 16  ;;  %v2207_v30 = vld [vmem:[%s2706_s10 + $0x2c] sm:$0x1] }
  0x29   : > { %v412_v37 = vsel %vm2737_vm3, %v407_v36, %v411_v33  ;;  %v775_v61 = vor.u32 %v774_v49, %v771_v48  ;;  %v786_v62 = vshll.u32 %v2202_v50, 16  ;;  %v797_v53 = vshrl.u32 %v2204_v52, 16  ;;  %v2209_v31 = vld [vmem:[%s2706_s10 + $0x34] sm:$0x1]  ;;  %v2628_v3 = vld [vmem:[%s2706_s10 + $0x38] ss:$8 sps:$4 sm:$0xff]  }
  0x2a   : > { %v2164_v39 = vcombine.low %v398_v1, %v412_v37  ;;  %v800_v57 = vshll.u32 %v2204_v52, 16  ;;  %v811_v0 = vshrl.u32 %v2206_v59, 16  ;;  %v814_v4 = vshll.u32 %v2206_v59, 16  ;;  %v2211_v28 = vld [vmem:[%s2706_s10 + $0x3c] sm:$0x1] }
  0x2b   : > { %v825_v5 = vshrl.u32 %v2208_v60, 16  ;;  %v828_v6 = vshll.u32 %v2208_v60, 16  ;;  %v762_v7 = vrot.slane %v761_v55, 4  ;;  %v766_v8 = vrot.slane %v764_v54, 5  ;;  %v2213_v54 = vld [vmem:[%s2706_s10 + $0x44] sm:$0x1] }
  0x2c   : > { %2361 = vmatmul.mubr.msk.bf16.gmra.mrb[4].mxu0 %vm434_vm2, %v2164_v39  ;;  %v780_v9 = vrot.slane %v778_v56, 5  ;;  %v776_v14 = vrot.slane %v775_v61, 4  ;;  %v788_v16 = vrot.slane %v786_v62, 5  ;;  %v799_v17 = vrot.slane %v797_v53, 4 }
  0x2d   : > { %2366 = vmatprep.mubr.msk.bf16.mxu0 %vm434_vm2, %v2170_v38  ;;  %v802_v18 = vrot.slane %v800_v57, 5  ;;  %v813_v21 = vrot.slane %v811_v0, 4  ;;  %v816_v22 = vrot.slane %v814_v4, 5  ;;  %v827_v23 = vrot.slane %v825_v5, 4 }
  0x2e   : > { %v830_v24 = vrot.slane %v828_v6, 5  ;;  %v792_v26 = vshll.u32 %v2203_v10, 16  ;;  %v806_v27 = vshll.u32 %v2205_v15, 16  ;;  %v767_v32 = vsel %vm2737_vm3, %v762_v7, %v766_v8 }
  0x2f   : > { %v781_v33 = vsel %vm2737_vm3, %v776_v14, %v780_v9  ;;  %v803_v1 = vor.u32 %v802_v18, %v799_v17  ;;  %v839_v36 = vshrl.u32 %v2210_v20, 16  ;;  %v842_v37 = vshll.u32 %v2210_v20, 16  ;;  %v1038_v17 = vld [vmem:[%s3018_s3] sm:$0xf] }
  0x30   : > { %v853_v38 = vshrl.u32 %v2212_v25, 16  ;;  %v856_v39 = vshll.u32 %v2212_v25, 16  ;;  %v820_v41 = vshll.u32 %v2207_v30, 16  ;;  %v834_v43 = vshll.u32 %v2209_v31, 16  ;;  %v2225_v18 = vld [vmem:[%s3017_s2] ss:$0 sm:$0xff] }
  0x31   : > { %v794_v2 = vrot.slane %v792_v26, 5  ;;  %v2216_v45 = vcombine.low %v767_v32, %v781_v33  ;;  %v804_v12 = vrot.slane %v803_v1, 4  ;;  %v808_v13 = vrot.slane %v806_v27, 5 }
  0x32   : > { %v855_v47 = vrot.slane %v853_v38, 4  ;;  %v858_v48 = vrot.slane %v856_v39, 5  ;;  %v822_v50 = vrot.slane %v820_v41, 5  ;;  %v836_v52 = vrot.slane %v834_v43, 5 }
  0x33   : > { %v848_v56 = vshll.u32 %v2211_v28, 16  ;;  %v862_v61 = vshll.u32 %v2213_v54, 16  ;;  %v2642_v10 = vmov 0.0   ;;  %v1067_v14 = vsel %vm1065_vm6, %v2226_v29, 0  ;;  %v2235_v54 = vld [vmem:[%s3018_s3 + $0x8] sm:$0xf] }
  0x34   : > { %2367 = vmatmul.mubr.msk.bf16.vlgmr.msra.gmra.mrb[0].mxu0 %vm434_vm2, %v2171_v40  ;;  %v817_v40 = vor.u32 %v816_v22, %v813_v21  ;;  %v859_v60 = vor.u32 %v858_v48, %v855_v47  ;;  %1003 = vst.msk [vmem:[#allocation2 + $0x30] sm:$0xff] %vm995_vm4, %v2642_v10  ;;  %996 = vst.msk [vmem:[#allocation2] sm:$0xff] %vm995_vm4, %v2642_v10 }
  0x35   : > { %2375 = vmatpush3.bf16.msra.mxu0 %v2620_v11  ;;  %2370 = vmatprep.mubr.msk.bf16.mxu0 %vm434_vm2, %v2172_v42  ;;  %v785_v11 = vrot.slane %v783_v58, 4  ;;  %v831_v42 = vor.u32 %v830_v24, %v827_v23  ;;  %v809_v58 = vsel %vm2737_vm3, %v804_v12, %v808_v13  ;;  %v864_v6 = vrot.slane %v862_v61, 5  ;;  %1004 = vst.msk [vmem:[#allocation2 + $0x38] sm:$0x3] %vm997_vm5, %v2642_v10 }
  0x36   : > { %2384 = vmatprep.subr.bf16.mxu0 %v2625_v44  ;;  %v818_v49 = vrot.slane %v817_v40, 4  ;;  %v860_v5 = vrot.slane %v859_v60, 4  ;;  %998 = vst.msk [vmem:[#allocation2 + $0x8] sm:$0x3] %vm997_vm5, %v2642_v10  ;;  %1000 = vst.msk [vmem:[#allocation2 + $0x18] sm:$0x3] %vm997_vm5, %v2642_v10 }
  0x37   : > { %v789_v35 = vor.u32 %v788_v16, %v785_v11  ;;  %999 = vst.msk [vmem:[#allocation2 + $0x10] sm:$0xff] %vm995_vm4, %v2642_v10  ;;  %1001 = vst.msk [vmem:[#allocation2 + $0x20] sm:$0xff] %vm995_vm4, %v2642_v10  ;;  %v2240_v11 = vld [vmem:[%s3018_s3 + $0xc] sm:$0xf]  ;;  %v2245_v16 = vld [vmem:[%s3018_s3 + $0x10] sm:$0xf] }
  0x38   : > { %v823_v62 = vsel %vm2737_vm3, %v818_v49, %v822_v50  ;;  %v865_v8 = vsel %vm2737_vm3, %v860_v5, %v864_v6  ;;  %1002 = vst.msk [vmem:[#allocation2 + $0x28] sm:$0x3] %vm997_vm5, %v2642_v10  ;;  %1006 = vst.msk [vmem:[#allocation2 + $0x48] sm:$0x3] %vm997_vm5, %v2642_v10  ;;  %2601 = vmatprep.subr.msk.bf16.mxu1 %vm1065_vm6, %v2240_v11  ;;  %v1343_v15 = vsel %vm1065_vm6, %v2240_v11, 0  ;;  %v1147_v50 = vsel %vm1065_vm6, %v1038_v17, 0 }
  0x39   : > { %v790_v46 = vrot.slane %v789_v35, 4  ;;  %1005 = vst.msk [vmem:[#allocation2 + $0x40] sm:$0xff] %vm995_vm4, %v2642_v10  ;;  %1007 = vst.msk [vmem:[#allocation2 + $0x50] sm:$0xff] %vm995_vm4, %v2642_v10  ;;  %2425 = vmatpush3.bf16.msra.mxu1 %v1343_v15  ;;  %v1241_v15 = vsel %vm1065_vm6, %v2235_v54, 0 }
  0x3a   : > { %1008 = vst.msk [vmem:[#allocation2 + $0x58] sm:$0x3] %vm997_vm5, %v2642_v10  ;;  %1010 = vst.msk [vmem:[#allocation2 + $0x68] sm:$0x3] %vm997_vm5, %v2642_v10  ;;  %2602 = vmatprep.subr.msk.bf16.mxu1 %vm1065_vm6, %v2245_v16 }
  0x3b   : > { %v795_v55 = vsel %vm2737_vm3, %v790_v46, %v794_v2  ;;  %1009 = vst.msk [vmem:[#allocation2 + $0x60] sm:$0xff] %vm995_vm4, %v2642_v10  ;;  %1011 = vst.msk [vmem:[#allocation2 + $0x70] sm:$0xff] %vm995_vm4, %v2642_v10  ;;  %v1026_v61 = vld [vmem:[#allocation2] sm:$0xff] }
  0x3c   : > { %2371 = vmatmul.mubr.msk.bf16.gmra.mrb[4].mxu0 %vm434_vm2, %v2173_v34  ;;  %v844_v34 = vrot.slane %v842_v37, 5  ;;  %v2217_v57 = vcombine.low %v795_v55, %v809_v58  ;;  %1012 = vst.msk [vmem:[#allocation2 + $0x78] sm:$0x3] %vm997_vm5, %v2642_v10  ;;  %1014 = vst.msk [vmem:[#allocation2 + $0x88] sm:$0x3] %vm997_vm5, %v2642_v10 }
  0x3d   : > { %2376 = vmatprep.mubr.msk.bf16.mxu0 %vm434_vm2, %v2624_v51  ;;  %v832_v51 = vrot.slane %v831_v42, 4  ;;  %1013 = vst.msk [vmem:[#allocation2 + $0x80] sm:$0xff] %vm995_vm4, %v2642_v10  ;;  %1015 = vst.msk [vmem:[#allocation2 + $0x90] sm:$0xff] %vm995_vm4, %v2642_v10  ;;  %v1039_v41 = vld [vmem:[#allocation2 + $0x1] sm:$0xff]  ;;  %v2250_v55 = vld [vmem:[%s3018_s3 + $0x14] sm:$0xf] }
  0x3e   : > { %1016 = vst.msk [vmem:[#allocation2 + $0x98] sm:$0x3] %vm997_vm5, %v2642_v10  ;;  %v1547_v11 = vsel %vm1065_vm6, %v2250_v55, 0 }
  0x3f   : > { %v837_v53 = vsel %vm2737_vm3, %v832_v51, %v836_v52  ;;  %v1445_v52 = vsel %vm1065_vm6, %v2245_v16, 0  ;;  %v2255_v16 = vld [vmem:[%s3018_s3 + $0x18] sm:$0xf] }
  0x40   : > { %v2218_v0 = vcombine.low %v823_v62, %v837_v53 }
  0x44   : > { %2377 = vmatmul.mubr.msk.bf16.vlgmr.msra.gmra.mrb[0].mxu0 %vm434_vm2, %v2626_v63  ;;  %v850_v63 = vrot.slane %v848_v56, 5 }
  0x45   : > { %2385 = vmatpush3.bf16.msra.mxu0 %v2625_v44  ;;  %2380 = vmatprep.mubr.msk.bf16.mxu0 %vm434_vm2, %v2627_v19  ;;  %v841_v44 = vrot.slane %v839_v36, 4 }
  0x46   : > { %2598 = vmatprep.subr.msk.bf16.mxu0 %vm1065_vm6, %v2226_v29 }
  0x47   : > { %v845_v59 = vor.u32 %v844_v34, %v841_v44 }
  0x49   : > { %v846_v4 = vrot.slane %v845_v59, 4 }
  0x4b   : > { %v851_v7 = vsel %vm2737_vm3, %v846_v4, %v850_v63 }
  0x4c   : > { %2381 = vmatmul.mubr.msk.bf16.gmra.mrb[4].mxu0 %vm434_vm2, %v2628_v3  ;;  %v2219_v9 = vcombine.low %v851_v7, %v865_v8 }
  0x4d   : > { %2386 = vmatprep.mubr.msk.bf16.mxu0 %vm434_vm2, %v2216_v45 }
  0x54   : > { %2387 = vmatmul.mubr.msk.bf16.vlgmr.msra.gmra.mrb[0].mxu0 %vm434_vm2, %v2217_v57 }
  0x55   : > { %2390 = vmatprep.mubr.msk.bf16.mxu0 %vm434_vm2, %v2218_v0  ;;  %2395 = vmatpush3.bf16.msra.mxu0 %v1067_v14 }
  0x56   : > { %2599 = vmatprep.subr.msk.bf16.mxu0 %vm1065_vm6, %v1038_v17  ;;  %v1214_v17 = vld [vmem:[#allocation2 + $0x2] sm:$0xff] }
  0x5c   : > { %2391 = vmatmul.mubr.msk.bf16.gmra.mrb[4].mxu0 %vm434_vm2, %v2219_v9 }
 0x127   : > { %v2388_v19 = vpop.f32.mrb[0].mxu0 }
 0x128   : > { %v981_v20 = vadd.f32 %v2388_v19, %v2225_v18  ;;  %v933_v21 = vpop.f32.mrb[1].mxu0 }
 0x129   : > { %v979_v22 = vadd.f32 %v2225_v18, %v933_v21  ;;  %v2389_v23 = vpop.f32.mrb[2].mxu0 }
 0x12a   : > { %v989_v24 = vmax.f32 %v981_v20, 0.0  ;;  %v982_v25 = vadd.f32 %v2389_v23, %v2225_v18  ;;  %v936_v26 = vpop.f32.mrb[3].mxu0 }
 0x12b   : > { %v987_v27 = vmax.f32 %v979_v22, 0.0  ;;  %v980_v30 = vadd.f32 %v2225_v18, %v936_v26 }
 0x12c   : > { %1020 = vst.msk [vmem:[#allocation2 + $0x31] sm:$0xff] %vm995_vm4, %v989_v24  ;;  %v990_v31 = vmax.f32 %v982_v25, 0.0 }
 0x12d   : > { %1018 = vst.msk [vmem:[#allocation2 + $0x11] sm:$0xff] %vm995_vm4, %v987_v27  ;;  %v988_v32 = vmax.f32 %v980_v30, 0.0 }
 0x12e   : > { %1021 = vst.msk [vmem:[#allocation2 + $0x41] sm:$0xff] %vm995_vm4, %v990_v31 }
 0x12f   : > { %1019 = vst.msk [vmem:[#allocation2 + $0x21] sm:$0xff] %vm995_vm4, %v988_v32  ;;  %v2392_v33 = vpop.f32.mrb[4].mxu0 }
 0x130   : > { %v985_v35 = vadd.f32 %v2392_v33, %v2225_v18  ;;  %v949_v1 = vpop.f32.mrb[5].mxu0 }
 0x131   : > { %v983_v36 = vadd.f32 %v2225_v18, %v949_v1  ;;  %v2393_v37 = vpop.f32.mrb[6].mxu0 }
 0x132   : > { %v993_v38 = vmax.f32 %v985_v35, 0.0  ;;  %v986_v39 = vadd.f32 %v2393_v37, %v2225_v18  ;;  %v952_v40 = vpop.f32.mrb[7].mxu0  ;;  %v1650_v35 = vsel %vm1065_vm6, %v2255_v16, 0 }
 0x133   : > { %v991_v42 = vmax.f32 %v983_v36, 0.0  ;;  %v984_v43 = vadd.f32 %v2225_v18, %v952_v40  ;;  %v1042_v12 = vld [vmem:[#allocation2 + $0x31] sm:$0xff]  ;;  %v2260_v36 = vld [vmem:[%s3018_s3 + $0x1c] sm:$0xf] }
 0x134   : > { %1024 = vst.msk [vmem:[#allocation2 + $0x71] sm:$0xff] %vm995_vm4, %v993_v38  ;;  %v994_v2 = vmax.f32 %v986_v39, 0.0  ;;  %v1040_v3 = vld [vmem:[#allocation2 + $0x11] sm:$0xff] }
 0x135   : > { %1022 = vst.msk [vmem:[#allocation2 + $0x51] sm:$0xff] %vm995_vm4, %v991_v42  ;;  %v992_v45 = vmax.f32 %v984_v43, 0.0  ;;  %v1047_v46 = vpack.c.bf16 %v1040_v3, %v1039_v41  ;;  %v1319_v13 = vld [vmem:[#allocation2 + $0x40] sm:$0xff]  ;;  %v1316_v44 = vld [vmem:[#allocation2 + $0x10] sm:$0xff]  ;;  %v1752_v41 = vsel %vm1065_vm6, %v2260_v36, 0 }
 0x136   : > { %1025 = vst.msk [vmem:[#allocation2 + $0x81] sm:$0xff] %vm995_vm4, %v994_v2  ;;  %v1041_v28 = vld [vmem:[#allocation2 + $0x21] sm:$0xff]  ;;  %v1318_v49 = vld [vmem:[#allocation2 + $0x30] sm:$0xff]  ;;  %v1034_v6 = vpack.c.bf16 %v1316_v44, %v1026_v61 }
 0x137   : > { %v1317_v34 = vld [vmem:[#allocation2 + $0x20] sm:$0xff]  ;;  %1023 = vst.msk [vmem:[#allocation2 + $0x61] sm:$0xff] %vm995_vm4, %v992_v45  ;;  %2396 = vmatprep.mubr.msk.bf16.mxu0 %vm995_vm4, %v1047_v46  ;;  %v2895_v47 = vpack.c.bf16 %v1042_v12, %v1041_v28  ;;  %v1325_v51 = vpack.c.bf16 %v1319_v13, %v1318_v49  ;;  %v1426_v8 = vpack.c.bf16 %v1041_v28, %v1040_v3  ;;  %v1215_v18 = vld [vmem:[#allocation2 + $0x12] sm:$0xff] }
 0x138   : > { %v1324_v48 = vpack.c.bf16 %v1317_v34, %v1316_v44  ;;  %v1043_v56 = vld [vmem:[#allocation2 + $0x41] sm:$0xff]  ;;  %v1035_v9 = vpack.c.bf16 %v1318_v49, %v1317_v34  ;;  %v1222_v22 = vpack.c.bf16 %v1215_v18, %v1214_v17  ;;  %v1217_v27 = vld [vmem:[#allocation2 + $0x32] sm:$0xff] }
 0x139   : > { %2397 = vmatmul.mubr.msk.bf16.vlgmr.msra.gmra.mrb[8].mxu0 %vm995_vm4, %v2895_v47  ;;  %v1427_v29 = vpack.c.bf16 %v1043_v56, %v1042_v12  ;;  %v1521_v20 = vld [vmem:[#allocation2 + $0x22] sm:$0xff]  ;;  %v1630_v43 = vld [vmem:[#allocation2 + $0x90] sm:$0xff] }
 0x13a   : > { %2426 = vmatprep.mubr.msk.bf16.mxu1 %vm995_vm4, %v1324_v48  ;;  %2405 = vmatpush3.bf16.msra.mxu0 %v1147_v50  ;;  %v1528_v24 = vpack.c.bf16 %v1521_v20, %v1215_v18  ;;  %v1218_v25 = vld [vmem:[#allocation2 + $0x42] sm:$0xff]  ;;  %v1223_v31 = vpack.c.bf16 %v1217_v27, %v1521_v20  ;;  %v1732_v46 = vld [vmem:[#allocation2 + $0x91] sm:$0xff] }
 0x13b   : > { %2427 = vmatmul.mubr.msk.bf16.vlgmr.msra.gmra.mrb[0].mxu1 %vm995_vm4, %v1325_v51  ;;  %2600 = vmatprep.subr.msk.bf16.mxu0 %vm1065_vm6, %v2235_v54  ;;  %v1046_v60 = vld [vmem:[#allocation2 + $0x71] sm:$0xff]  ;;  %v1529_v33 = vpack.c.bf16 %v1218_v25, %v1217_v27  ;;  %v2265_v42 = vld [vmem:[%s3018_s3 + $0x20] sm:$0xf] }
 0x13c   : > { %2435 = vmatpush3.bf16.msra.mxu1 %v1445_v52  ;;  %v1044_v58 = vld [vmem:[#allocation2 + $0x51] sm:$0xff]  ;;  %v1854_v3 = vsel %vm1065_vm6, %v2265_v42, 0  ;;  %v2629_v45 = vld [vmem:[%s3020_s5] sm:$0xff]  }
 0x13d   : > { %2603 = vmatprep.subr.msk.bf16.mxu1 %vm1065_vm6, %v2250_v55  ;;  %v2911_v59 = vpack.c.bf16 %v1044_v58, %v1043_v56  ;;  %v2913_v62 = vld [vmem:[#allocation2 + $0x80] sm:$0xff]  ;;  %v1320_v57 = vld [vmem:[#allocation2 + $0x50] sm:$0xff] }
 0x13e   : > { %v1045_v53 = vld [vmem:[#allocation2 + $0x61] sm:$0xff]  ;;  %v1322_v5 = vld [vmem:[#allocation2 + $0x70] sm:$0xff]  ;;  %v1036_v10 = vpack.c.bf16 %v1320_v57, %v1319_v13  ;;  %v1634_v2 = vpack.c.bf16 %v1630_v43, %v2913_v62 }
 0x13f   : > { %v1321_v63 = vld [vmem:[#allocation2 + $0x60] sm:$0xff]  ;;  %2400 = vmatprep.mubr.msk.bf16.mxu0 %vm995_vm4, %v2911_v59  ;;  %v2917_v0 = vpack.c.bf16 %v1046_v60, %v1045_v53  ;;  %v1327_v7 = vpack.c.bf16 %v2913_v62, %v1322_v5  ;;  %v1428_v14 = vpack.c.bf16 %v1045_v53, %v1044_v58  ;;  %v1219_v26 = vld [vmem:[#allocation2 + $0x52] sm:$0xff] }
 0x140   : > { %v1326_v4 = vpack.c.bf16 %v1321_v63, %v1320_v57  ;;  %v1425_v19 = vld [vmem:[#allocation2 + $0x81] sm:$0xff]  ;;  %v1037_v21 = vpack.c.bf16 %v1322_v5, %v1321_v63  ;;  %v1224_v32 = vpack.c.bf16 %v1219_v26, %v1218_v25  ;;  %v1221_v38 = vld [vmem:[#allocation2 + $0x72] sm:$0xff]  ;;  %v2280_v53 = vld [vmem:[%s3021_s6] ss:$0 sm:$0xff] }
 0x141   : > { %2401 = vmatmul.mubr.msk.bf16.gmra.mrb[12].mxu0 %vm995_vm4, %v2917_v0  ;;  %v1429_v23 = vpack.c.bf16 %v1425_v19, %v1046_v60  ;;  %v1525_v30 = vld [vmem:[#allocation2 + $0x62] sm:$0xff]  ;;  %v1736_v12 = vpack.c.bf16 %v1732_v46, %v1425_v19  ;;  %v1834_v13 = vld [vmem:[#allocation2 + $0x92] sm:$0xff] }
 0x142   : > { %2430 = vmatprep.mubr.msk.bf16.mxu1 %vm995_vm4, %v1326_v4  ;;  %2406 = vmatprep.mubr.msk.bf16.mxu0 %vm995_vm4, %v1034_v6  ;;  %v1530_v1 = vpack.c.bf16 %v1525_v30, %v1219_v26  ;;  %v1527_v37 = vld [vmem:[#allocation2 + $0x82] sm:$0xff]  ;;  %v1225_v39 = vpack.c.bf16 %v1221_v38, %v1525_v30  ;;  %v2631_v34 = vld [vmem:[%s2706_s10 + $0x10] ss:$8 sps:$4 sm:$0xff]  }
 0x143   : > { %2431 = vmatmul.mubr.msk.bf16.gmra.mrb[4].mxu1 %vm995_vm4, %v1327_v7  ;;  %v1531_v40 = vpack.c.bf16 %v1527_v37, %v1221_v38  ;;  %v2630_v28 = vld [vmem:[%s2706_s10] ss:$8 sps:$4 sm:$0xff]   ;;  %v1838_v44 = vpack.c.bf16 %v1834_v13, %v1527_v37  ;;  %v2633_v48 = vld [vmem:[%s2706_s10 + $0x30] ss:$8 sps:$4 sm:$0xff]  }
 0x144   : > { %2436 = vmatprep.mubr.msk.bf16.mxu1 %vm995_vm4, %v1426_v8 }
 0x149   : > { %2407 = vmatmul.mubr.msk.bf16.vlgmr.msra.gmra.mrb[8].mxu0 %vm995_vm4, %v1035_v9 }
 0x14a   : > { %2410 = vmatprep.mubr.msk.bf16.mxu0 %vm995_vm4, %v1036_v10  ;;  %2415 = vmatpush3.bf16.msra.mxu0 %v1241_v15 }
 0x14b   : > { %2437 = vmatmul.mubr.msk.bf16.vlgmr.msra.gmra.mrb[0].mxu1 %vm995_vm4, %v1427_v29 }
 0x14c   : > { %2445 = vmatpush3.bf16.msra.mxu1 %v1547_v11  ;;  %2440 = vmatprep.mubr.msk.bf16.mxu1 %vm995_vm4, %v1428_v14 }
 0x14d   : > { %2604 = vmatprep.subr.msk.bf16.mxu1 %vm1065_vm6, %v2255_v16 }
 0x151   : > { %2411 = vmatmul.mubr.msk.bf16.gmra.mrb[12].mxu0 %vm995_vm4, %v1037_v21 }
 0x152   : > { %2416 = vmatprep.mubr.msk.bf16.mxu0 %vm995_vm4, %v1222_v22 }
 0x153   : > { %2441 = vmatmul.mubr.msk.bf16.gmra.mrb[4].mxu1 %vm995_vm4, %v1429_v23 }
 0x154   : > { %2446 = vmatprep.mubr.msk.bf16.mxu1 %vm995_vm4, %v1528_v24 }
 0x159   : > { %2417 = vmatmul.mubr.msk.bf16.vlgmr.msra.gmra.mrb[8].mxu0 %vm995_vm4, %v1223_v31 }
 0x15a   : > { %2420 = vmatprep.mubr.msk.bf16.mxu0 %vm995_vm4, %v1224_v32 }
 0x15b   : > { %2447 = vmatmul.mubr.msk.bf16.vlgmr.msra.gmra.mrb[0].mxu1 %vm995_vm4, %v1529_v33 }
 0x15c   : > { %2455 = vmatpush3.bf16.msra.mxu1 %v1650_v35  ;;  %2450 = vmatprep.mubr.msk.bf16.mxu1 %vm995_vm4, %v1530_v1 }
 0x15d   : > { %2605 = vmatprep.subr.msk.bf16.mxu1 %vm1065_vm6, %v2260_v36 }
 0x161   : > { %2421 = vmatmul.mubr.msk.bf16.gmra.mrb[12].mxu0 %vm995_vm4, %v1225_v39 }
 0x163   : > { %2451 = vmatmul.mubr.msk.bf16.gmra.mrb[4].mxu1 %vm995_vm4, %v1531_v40 }
 0x164   : > { %2456 = vmatprep.mubr.msk.bf16.mxu1 %vm995_vm4, %v1035_v9 }
 0x16b   : > { %2457 = vmatmul.mubr.msk.bf16.vlgmr.msra.gmra.mrb[0].mxu1 %vm995_vm4, %v1036_v10 }
 0x16c   : > { %2465 = vmatpush3.bf16.msra.mxu1 %v1752_v41  ;;  %2460 = vmatprep.mubr.msk.bf16.mxu1 %vm995_vm4, %v1037_v21 }
 0x16d   : > { %2606 = vmatprep.subr.msk.bf16.mxu1 %vm1065_vm6, %v2265_v42 }
 0x173   : > { %2461 = vmatmul.mubr.msk.bf16.gmra.mrb[4].mxu1 %vm995_vm4, %v1634_v2 }
 0x174   : > { %2466 = vmatprep.mubr.msk.bf16.mxu1 %vm995_vm4, %v2895_v47  ;;  %v2632_v47 = vld [vmem:[%s2706_s10 + $0x20] ss:$8 sps:$4 sm:$0xff]  }
 0x17b   : > { %2467 = vmatmul.mubr.msk.bf16.vlgmr.msra.gmra.mrb[0].mxu1 %vm995_vm4, %v2911_v59  ;;  %v2270_v59 = vld [vmem:[%s3019_s4] ss:$0 sm:$0xff] }
 0x17c   : > { %2475 = vmatpush3.bf16.msra.mxu1 %v1854_v3  ;;  %2470 = vmatprep.mubr.msk.bf16.mxu1 %vm995_vm4, %v2917_v0 }
 0x17d   : > { %2484 = vmatprep.subr.bf16.mxu1 %v2629_v45 }
 0x183   : > { %2471 = vmatmul.mubr.msk.bf16.gmra.mrb[4].mxu1 %vm995_vm4, %v1736_v12 }
 0x184   : > { %2476 = vmatprep.mubr.msk.bf16.mxu1 %vm995_vm4, %v1223_v31 }
 0x18b   : > { %2477 = vmatmul.mubr.msk.bf16.vlgmr.msra.gmra.mrb[0].mxu1 %vm995_vm4, %v1224_v32 }
 0x18c   : > { %2485 = vmatpush3.bf16.msra.mxu1 %v2629_v45  ;;  %2480 = vmatprep.mubr.msk.bf16.mxu1 %vm995_vm4, %v1225_v39 }
 0x193   : > { %2481 = vmatmul.mubr.msk.bf16.gmra.mrb[4].mxu1 %vm995_vm4, %v1838_v44 }
 0x194   : > { %2486 = vmatprep.mubr.msk.bf16.mxu1 %vm434_vm2, %v2630_v28 }
 0x19b   : > { %2487 = vmatmul.mubr.msk.bf16.vlgmr.msra.gmra.mrb[0].mxu1 %vm434_vm2, %v2631_v34 }
 0x19c   : > { %2490 = vmatprep.mubr.msk.bf16.mxu1 %vm434_vm2, %v2632_v47 }
 0x1a3   : > { %2491 = vmatmul.mubr.msk.bf16.gmra.mrb[4].mxu1 %vm434_vm2, %v2633_v48 }
 0x22c   : > { %v2418_v49 = vpop.f32.mrb[8].mxu0 }
 0x22d   : > { %v1277_v50 = vpop.f32.mrb[9].mxu0  ;;  %v2494_v60 = vadd.f32 %v2418_v49, %v2270_v59 }
 0x22e   : > { %v2419_v51 = vpop.f32.mrb[10].mxu0  ;;  %v2496_v61 = vadd.f32 %v2270_v59, %v1277_v50 }
 0x22f   : > { %v1280_v52 = vpop.f32.mrb[11].mxu0  ;;  %v2498_v57 = vadd.f32 %v2419_v51, %v2270_v59 }
 0x230   : > { %v2500_v4 = vadd.f32 %v2270_v59, %v1280_v52 }
 0x234   : > { %v2422_v54 = vpop.f32.mrb[12].mxu0 }
 0x235   : > { %v1293_v55 = vpop.f32.mrb[13].mxu0  ;;  %v2502_v17 = vadd.f32 %v2422_v54, %v2270_v59 }
 0x236   : > { %v2423_v56 = vpop.f32.mrb[14].mxu0  ;;  %v2504_v19 = vadd.f32 %v2270_v59, %v1293_v55 }
 0x237   : > { %v1296_v58 = vpop.f32.mrb[15].mxu0  ;;  %v2506_v22 = vadd.f32 %v2423_v56, %v2270_v59 }
 0x238   : > { %v2508_v25 = vadd.f32 %v2270_v59, %v1296_v58 }
 0x26e   : > { %v2488_v62 = vpop.f32.mrb[0].mxu1 }
 0x26f   : > { %v2495_v63 = vadd.f32 %v2494_v60, %v2488_v62  ;;  %v2026_v0 = vpop.f32.mrb[1].mxu1 }
 0x270   : > { %v2497_v5 = vadd.f32 %v2496_v61, %v2026_v0  ;;  %v2489_v6 = vpop.f32.mrb[2].mxu1 }
 0x271   : > { %v2074_v7 = vadd.f32 %v2495_v63, %v2280_v53  ;;  %v2499_v8 = vadd.f32 %v2498_v57, %v2489_v6  ;;  %v2029_v9 = vpop.f32.mrb[3].mxu1 }
 0x272   : > { %v2072_v10 = vadd.f32 %v2497_v5, %v2280_v53  ;;  %v2501_v29 = vadd.f32 %v2500_v4, %v2029_v9 }
 0x273   : > { %v2082_v11 = vmax.f32 %v2074_v7, 0.0  ;;  %v2075_v14 = vadd.f32 %v2499_v8, %v2280_v53 }
 0x274   : > { %v2080_v15 = vmax.f32 %v2072_v10, 0.0  ;;  %v2073_v16 = vadd.f32 %v2501_v29, %v2280_v53 }
 0x275   : > { %2090 = vst.msk [vmem:[%s2994_s23 + $0x10] sm:$0xff] %vm995_vm4, %v2082_v11  ;;  %v2083_v18 = vmax.f32 %v2075_v14, 0.0 }
 0x276   : > { %2088 = vst.msk [vmem:[%s2994_s23] sm:$0xff] %vm995_vm4, %v2080_v15  ;;  %v2081_v20 = vmax.f32 %v2073_v16, 0.0  ;;  %v2492_v21 = vpop.f32.mrb[4].mxu1 }
 0x277   : > { %2091 = vst.msk [vmem:[%s2994_s23 + $0x18] sm:$0xff] %vm995_vm4, %v2083_v18  ;;  %v2503_v23 = vadd.f32 %v2502_v17, %v2492_v21  ;;  %v2042_v24 = vpop.f32.mrb[5].mxu1 }
 0x278   : > { %2089 = vst.msk [vmem:[%s2994_s23 + $0x8] sm:$0xff] %vm995_vm4, %v2081_v20  ;;  %v2505_v26 = vadd.f32 %v2504_v19, %v2042_v24  ;;  %v2493_v27 = vpop.f32.mrb[6].mxu1 }
 0x279   : > { %v2078_v30 = vadd.f32 %v2503_v23, %v2280_v53  ;;  %v2507_v31 = vadd.f32 %v2506_v22, %v2493_v27  ;;  %v2045_v32 = vpop.f32.mrb[7].mxu1 }
 0x27a   : > { %v2076_v33 = vadd.f32 %v2505_v26, %v2280_v53  ;;  %v2509_v35 = vadd.f32 %v2508_v25, %v2045_v32 }
 0x27b   : > { %v2086_v1 = vmax.f32 %v2078_v30, 0.0  ;;  %v2079_v36 = vadd.f32 %v2507_v31, %v2280_v53 }
 0x27c   : > { %v2084_v37 = vmax.f32 %v2076_v33, 0.0  ;;  %v2077_v38 = vadd.f32 %v2509_v35, %v2280_v53 }
 0x27d   : > { %2094 = vst.msk [vmem:[%s2994_s23 + $0x30] sm:$0xff] %vm995_vm4, %v2086_v1  ;;  %v2087_v39 = vmax.f32 %v2079_v36, 0.0 }
 0x27e   : > { %2092 = vst.msk [vmem:[%s2994_s23 + $0x20] sm:$0xff] %vm995_vm4, %v2084_v37  ;;  %v2085_v40 = vmax.f32 %v2077_v38, 0.0 }
 0x27f   : > { %2095 = vst.msk [vmem:[%s2994_s23 + $0x38] sm:$0xff] %vm995_vm4, %v2087_v39 }
 0x280   : > { %2093 = vst.msk [vmem:[%s2994_s23 + $0x28] sm:$0xff] %vm995_vm4, %v2085_v40 }
 0x281 PF: > { %s17_s24 = sadd.s32 1, %s2640_s24  }
 0x282   : > { %p14_p4 = scmp.ge.s32.totalorder %s17_s24, 4  }
 0x284   :  { %16 = sbr.rel (!%p14_p4) target bundleno = 1 (0x1), region = 92 }

</bundles_post_ra>
